<compile_context>
chip_gen: v7x
topology: tpu7x:2x2x1
jax: 0.10.0
libtpu: 0.0.40
codegen_flags: <defaults>
</compile_context>

<pallas_src>
import jax
import jax.numpy as jnp
from jax.experimental import pallas as pl
from jax.experimental.pallas import tpu as pltpu

_LANE = 128


def _infonce_tile_kernel(pos_ref, neg_ref, out_ref):
    """One batch tile.

    pos_ref: (1, T)      positives, batch on the 128-lane axis
    neg_ref: (nneg, T)   negatives, batch on the 128-lane axis
    out_ref: (1, T)      per-element loss  log1p(sum_j exp(pos - neg_j))
    """
    pos = pos_ref[...].astype(jnp.float32)                      # (1, T)
    neg = neg_ref[...].astype(jnp.float32)                      # (nneg, T)
    # exactly one exp per negative element (EUP), sublane reduce (XLU),
    # one log1p per positive element; no divide, no global-min pass.
    s = jnp.sum(jnp.exp(pos - neg), axis=0, keepdims=True)      # (1, T)
    out_ref[...] = jnp.log1p(s)


def _pick_batch_tile(b_pad, nneg, dtype_bytes):
    # Keep each input tile (pos row + nneg neg rows) to a few MiB so the
    # double-buffered pipeline stays well inside the scoped-VMEM limits
    # (16 MiB v5e, 32 MiB v6e/v7x; 64 MiB physical on v7x).
    budget = 4 * 1024 * 1024
    for t in (2048, 1024, 512, 256, 128):
        if b_pad % t == 0 and (nneg + 1) * t * dtype_bytes <= budget:
            return t
    return _LANE


def infonce_loss(y_hat, y, nneg):
    """Pallas TPU implementation of InfoNCELoss.forward."""
    total = y.shape[0]                      # static Python int
    bsz = total // (nneg + 1)

    # Layout plumbing (no compute): batch goes on the 128-lane axis.
    # Input dtype is passed through unchanged (bf16 stays bf16 → half HBM bytes);
    # the kernel upcasts to f32 internally.
    pos = y_hat[:bsz].reshape(1, bsz)                           # (1, bsz)
    neg = y_hat[bsz:].reshape(bsz, nneg).T                      # (nneg, bsz)

    b_pad = ((bsz + _LANE - 1) // _LANE) * _LANE
    if b_pad != bsz:
        # zero padding -> finite garbage in padded lanes; sliced off below.
        pos = jnp.pad(pos, ((0, 0), (0, b_pad - bsz)))
        neg = jnp.pad(neg, ((0, 0), (0, b_pad - bsz)))

    itemsize = jnp.dtype(y_hat.dtype).itemsize
    t = _pick_batch_tile(b_pad, nneg, itemsize)
    grid = (b_pad // t,)

    cost = pl.CostEstimate(
        flops=2 * bsz * nneg,
        transcendentals=bsz * (nneg + 1),
        bytes_accessed=bsz * (nneg + 1) * itemsize + b_pad * 4,
    )

    losses = pl.pallas_call(
        _infonce_tile_kernel,
        out_shape=jax.ShapeDtypeStruct((1, b_pad), jnp.float32),
        grid=grid,
        in_specs=[
            pl.BlockSpec((1, t), lambda i: (0, i)),
            pl.BlockSpec((neg.shape[0], t), lambda i: (0, i)),
        ],
        out_specs=pl.BlockSpec((1, t), lambda i: (0, i)),
        compiler_params=pltpu.CompilerParams(
            dimension_semantics=("parallel",),
        ),
        cost_estimate=cost,
    )(pos, neg)

    # Tiny finishing reduction in plain JAX; padded lanes are dropped.
    return jnp.sum(losses[0, :bsz]) / jnp.float32(total)


def _infonce_ref(y_hat, y, nneg):
    # Pure-JAX reference mirroring the PyTorch code exactly.
    total = y.shape[0]
    bsz = total // (nneg + 1)
    y_hat = y_hat - jnp.min(y_hat)
    p = jnp.exp(-y_hat[:bsz])
    pneg = jnp.sum(jnp.exp(-y_hat[bsz:]).reshape(bsz, nneg), axis=-1)
    return jnp.sum(-jnp.log(p / (p + pneg))) / total


if __name__ == "__main__":
    key = jax.random.PRNGKey(0)

    # Case 1: small shape consistent with the module (bsz=8, nneg=3, N=32).
    nneg = 3
    bsz = 8
    n = bsz * (nneg + 1)
    k1, k2, k3 = jax.random.split(key, 3)
    y_hat = jax.random.normal(k1, (n,), dtype=jnp.float32)
    y = jax.random.normal(k2, (n,), dtype=jnp.float32)   # only its length is used

    loss = infonce_loss(y_hat, y, nneg)
    jax.block_until_ready(loss)
    ref = _infonce_ref(y_hat, y, nneg)
    assert jnp.allclose(loss, ref, rtol=1e-5, atol=1e-5), (loss, ref)

    # Case 2: exercises the multi-tile grid path (bsz=384 -> 3 batch tiles).
    nneg2 = 5
    bsz2 = 384
    n2 = bsz2 * (nneg2 + 1)
    y_hat2 = jax.random.normal(k3, (n2,), dtype=jnp.float32)
    y2 = jnp.zeros((n2,), dtype=jnp.float32)

    loss2 = infonce_loss(y_hat2, y2, nneg2)
    jax.block_until_ready(loss2)
    ref2 = _infonce_ref(y_hat2, y2, nneg2)
    assert jnp.allclose(loss2, ref2, rtol=1e-5, atol=1e-5), (loss2, ref2)

    print("KERNEL_OK")
</pallas_src>

<mosaic_0001>
module attributes {stable_mosaic.version = 11 : i64} {
  func.func @_infonce_tile_kernel(%arg0: i32, %arg1: memref<1x128xf32, #tpu.memory_space<vmem>>, %arg2: memref<3x128xf32, #tpu.memory_space<vmem>>, %arg3: memref<1x128xf32, #tpu.memory_space<vmem>>) attributes {dimension_semantics = [#tpu.dimension_semantics<parallel>], iteration_bounds = array<i64: 1>, scalar_prefetch = 0 : i64, scratch_operands = 0 : i64, tpu.core_type = #tpu.core_type<tc>, window_params = [{transform_indices = @transform_0, window_bounds = array<i64: 1, 128>}, {transform_indices = @transform_1, window_bounds = array<i64: 3, 128>}, {transform_indices = @transform_2, window_bounds = array<i64: 1, 128>}]} {
    %c0 = arith.constant 0 : index
    %c0_0 = arith.constant 0 : index
    %0 = vector.load %arg1[%c0, %c0_0] : memref<1x128xf32, #tpu.memory_space<vmem>>, vector<1x128xf32>
    %c0_1 = arith.constant 0 : index
    %c0_2 = arith.constant 0 : index
    %1 = vector.load %arg2[%c0_1, %c0_2] : memref<3x128xf32, #tpu.memory_space<vmem>>, vector<3x128xf32>
    %2 = vector.broadcast %0 : vector<1x128xf32> to vector<3x128xf32>
    %3 = arith.subf %2, %1 : vector<3x128xf32>
    %4 = math.exp %3 : vector<3x128xf32>
    %cst = arith.constant dense<0.000000e+00> : vector<128xf32>
    %5 = vector.multi_reduction <add>, %4, %cst [0] : vector<3x128xf32> to vector<128xf32>
    %6 = vector.shape_cast %5 : vector<128xf32> to vector<1x128xf32>
    %7 = math.log1p %6 : vector<1x128xf32>
    %c0_3 = arith.constant 0 : index
    %c0_4 = arith.constant 0 : index
    %8 = vector.load %arg3[%c0_3, %c0_4] : memref<1x128xf32, #tpu.memory_space<vmem>>, vector<1x128xf32>
    tpu.vector_store %arg3[%c0_3, %c0_4], %7 {strides = array<i32>} : memref<1x128xf32, #tpu.memory_space<vmem>>, vector<1x128xf32>,
    return
  }
  func.func @transform_0(%arg0: i32) -> (i32, i32) {
    %c0_i32 = arith.constant 0 : i32
    %c0_i32_0 = arith.constant 0 : i32
    return %c0_i32, %arg0 : i32, i32
  }
  func.func @transform_1(%arg0: i32) -> (i32, i32) {
    %c0_i32 = arith.constant 0 : i32
    %c0_i32_0 = arith.constant 0 : i32
    return %c0_i32, %arg0 : i32, i32
  }
  func.func @transform_2(%arg0: i32) -> (i32, i32) {
    %c0_i32 = arith.constant 0 : i32
    %c0_i32_0 = arith.constant 0 : i32
    return %c0_i32, %arg0 : i32, i32
  }
}

</mosaic_0001>

<bundles_post_ra>
// kernel: tpu_custom_call.1
= control target key start
LH: loop header
LB: loop body
LE: loop exit
PB: predicated region body
PF: predicated region fallthrough
CT: control target
= control target key end

     0   :  { %7 = vsyncpa [#allocation3], 0  ;;  %s215_s0 = inlined_call_operand.hbm [shape: f32[1,128], index: 0, kind: input, shape index: {}]   ;;  %s216_s1 = inlined_call_operand.hbm [shape: f32[3,128], index: 1, kind: input, shape index: {}]   ;;  %s217_s2 = inlined_call_operand.hbm [shape: f32[1,128], index: 2, kind: output, shape index: {}]  }
   0x1   :  { %8 = vsyncpa [#allocation6], 0 }
   0x2   :  { %9 = vsyncpa [#allocation4], 0  ;;  %s161_s9 = smov [#allocation2]   ;;  %s162_s11 = smov [#allocation5]  }
   0x3   :  { %s16_s10 = sshll.u32 %s161_s9, 4  ;;  %s26_s12 = sshll.u32 %s162_s11, 4  ;;  %s17_s10 = int_to_ptr.vmem [resolvable:$true] %s16_s10  ;;  %s27_s12 = int_to_ptr.vmem [resolvable:$true] %s26_s12 }
   0x4   :  { %s89_s15 = scalar_lea.hbm %s215_s0, 16 }
   0x5   :  { %p90_p0 = scmp.ne.s32.totalorder %s215_s0, %s89_s15  ;;  %p93_p1 = scmp.lt.u32.totalorder %s89_s15, %s215_s0 }
   0x7   :  { %p95_p2 = pnand %p93_p1, %p90_p0 }
   0x9   :  { %98 = shalt.err (!%p95_p2)
}
   0xa   :  { %s99_s20 = scalar_lea.vmem %s17_s10, 16  ;;  %s103_s21 = scalar_lea.vmem %s17_s10, 32 }
   0xb   :  { %p100_p3 = scmp.ne.s32.totalorder %s17_s10, %s99_s20  ;;  %p104_p4 = scmp.lt.s32.totalorder %s17_s10, %s17_s10 }
   0xc   :  { %p105_p5 = scmp.lt.s32.totalorder %s103_s21, %s99_s20 }
   0xe   :  { %p106_p6 = por %p105_p5, %p104_p4 }
  0x10   :  { %p107_p7 = pnand %p106_p6, %p100_p3 }
  0x12   :  { %110 = shalt.err (!%p107_p7)
}
  0x13   :  { %19 = dma.hbm_to_vmem [thread:$0]  %s215_s0, 16, %s17_s10, [#allocation3]  }
  0x14   :  { %s111_s26 = scalar_lea.hbm %s216_s1, 64 }
  0x15   :  { %p112_p8 = scmp.ne.s32.totalorder %s216_s1, %s111_s26  ;;  %p115_p9 = scmp.lt.u32.totalorder %s111_s26, %s216_s1 }
  0x17   :  { %p117_p10 = pnand %p115_p9, %p112_p8 }
  0x19   :  { %120 = shalt.err (!%p117_p10)
}
  0x1a   :  { %s121_s3 = scalar_lea.vmem %s27_s12, 64  ;;  %p126_p12 = scmp.lt.s32.totalorder %s27_s12, %s27_s12 }
  0x1b   :  { %p122_p11 = scmp.ne.s32.totalorder %s27_s12, %s121_s3  ;;  %p127_p13 = scmp.lt.s32.totalorder %s121_s3, %s121_s3 }
  0x1d   :  { %p128_p0 = por %p127_p13, %p126_p12 }
  0x1f   :  { %p129_p1 = pnand %p128_p0, %p122_p11 }
  0x21   :  { %132 = shalt.err (!%p129_p1)
}
  0x22   :  { %29 = dma.hbm_to_vmem [thread:$0]  %s216_s1, 64, %s27_s12, [#allocation6]  }
  0x23   :  { %155 = dma.done.wait [#allocation3], 16  }
  0x24   :  { %156 = vsyncadd [#allocation3], 4294967280 }
  0x25   :  { %157 = dma.done.wait [#allocation6], 64  }
  0x26   :  { %158 = vsyncadd [#allocation6], 4294967232  ;;  %v81_v0 = vld [vmem:[#allocation2] ss:$0 sm:$0xff]  ;;  %v37_v1 = vld [vmem:[#allocation5] sm:$0x7] }
  0x27   :  { %v44_v2 = vsub.f32 %v81_v0, %v37_v1  ;;  %vm47_vm0 = vcmask 1042432   ;;  %s163_s1 = smov [#allocation7]  }
  0x28   :  { %s71_s5 = sshll.u32 %s163_s1, 4  ;;  %s72_s5 = int_to_ptr.vmem [resolvable:$true] %s71_s5 }
  0x29   :  { %v45_v3 = vmul.f32 1.442695, %v44_v2  ;;  %s133_s6 = scalar_lea.vmem %s72_s5, 16  ;;  %s137_s7 = scalar_lea.vmem %s72_s5, 32 }
  0x2a   :  { %p134_p2 = scmp.ne.s32.totalorder %s72_s5, %s133_s6  ;;  %p138_p3 = scmp.lt.s32.totalorder %s72_s5, %s72_s5 }
  0x2b   :  { %85 = vpow2.f32 %v45_v3  ;;  %p139_p4 = scmp.lt.s32.totalorder %s137_s7, %s133_s6 }
  0x2d   :  { %p140_p5 = por %p139_p4, %p138_p3 }
  0x2f   :  { %p141_p6 = pnand %p140_p5, %p134_p2 }
  0x35   :  { %v86_v4 = vpop.eup %85 }
  0x36   :  { %v48_v5 = vsel %vm47_vm0, %v86_v4, 0.0 }
  0x37   :  { %v49_v6 = vrot.slane %v48_v5, 4 }
  0x39   :  { %v50_v7 = vadd.f32 %v49_v6, %v48_v5 }
  0x3b   :  { %v51_v8 = vrot.slane %v50_v7, 2 }
  0x3d   :  { %v52_v9 = vadd.f32 %v51_v8, %v50_v7 }
  0x3f   :  { %v53_v10 = vrot.slane %v52_v9, 1 }
  0x41   :  { %v54_v11 = vadd.f32 %v53_v10, %v52_v9 }
  0x43   :  { %v55_v12 = vadd.f32 1.0, %v54_v11  ;;  %v58_v13 = vmul.f32 -0.5, %v54_v11  ;;  %v61_v15 = vand.u32 2147483647, %v54_v11 }
  0x45   :  { %87 = vlog2.f32 %v55_v12  ;;  %v59_v14 = vadd.f32 1.0, %v58_v13  ;;  %vm62_vm1 = vcmp.lt.f32.partialorder %v61_v15, 0.0004427343 }
  0x47   :  { %v60_v16 = vmul.f32 %v59_v14, %v54_v11 }
  0x4f   :  { %v88_v17 = vpop.eup %87 }
  0x50   :  { %v57_v18 = vmul.f32 0.6931472, %v88_v17 }
  0x52   :  { %v63_v19 = vsel %vm62_vm1, %v60_v16, %v57_v18 }
  0x53   :  { %64 = vst [vmem:[#allocation7] sm:$0x1] %v63_v19 }
  0x54   :  { %144 = shalt.err (!%p141_p6)
}
  0x55   :  { %s145_s10 = scalar_lea.hbm %s217_s2, 16 }
  0x56   :  { %p146_p7 = scmp.ne.s32.totalorder %s217_s2, %s145_s10  ;;  %p149_p8 = scmp.lt.u32.totalorder %s145_s10, %s217_s2 }
  0x58   :  { %p151_p9 = pnand %p149_p8, %p146_p7 }
  0x5a   :  { %154 = shalt.err (!%p151_p9)
}
  0x5b   :  { %74 = dma.vmem_to_hbm [thread:$0]  %s72_s5, 16, %s217_s2, [#allocation4]  }
  0x5c   :  { %159 = dma.done.wait [#allocation4], 16  }
  0x5d   :  { %160 = vsyncadd [#allocation4], 4294967280 }
  0x5e   :  { %78 = vsyncpa [#allocation3], 1 }
  0x5f   :  { %79 = vsyncpa [#allocation6], 1 }
  0x60   :  { %80 = vsyncpa [#allocation4], 1 }

</bundles_post_ra>
